<compile_context>
chip_gen: v5e
topology: v5e:2x2
jax: 0.10.0
libtpu: 0.0.40
codegen_flags: <defaults>
</compile_context>

<pallas_src>
import jax
import jax.numpy as jnp
from jax import lax
from jax.experimental import pallas as pl
from jax.experimental.pallas import tpu as pltpu

_ROW_CHUNK = 32          # sublane rows per inner chunk (bounds vreg pressure)
_STATIC_UNROLL_MAX = 8   # <= this many chunks -> static Python unroll


def _sigmoid(v):
    # tanh form: a single EUP op per vreg instead of exp + exact f32 divide.
    return 0.5 * jnp.tanh(0.5 * v) + 0.5


def _pick_row_chunk(h):
    """Multiple-of-8 chunk (<= _ROW_CHUNK) minimizing last-chunk overlap recompute."""
    if h <= 8:
        return h
    best, best_waste = 8, None
    r = 8
    while r <= min(_ROW_CHUNK, h):
        waste = (-(-h // r)) * r - h
        if best_waste is None or waste <= best_waste:
            best, best_waste = r, waste
        r += 8
    return best


def _out_kernel(w_ref, b_ref, x_ref, o_ref):
    """sigmoid(1x1 conv, pad=1) for one (batch, out-channel) pair.

    w_ref: SMEM (Cout*Cin,) f32  -- conv weight, row-major (Cout, Cin)
    b_ref: SMEM (Cout,)     f32
    x_ref: VMEM (Cin, H, W)      -- whole image, resident across the Cout grid axis
    o_ref: VMEM (Hp, Wp)         -- final padded output plane (Hp=H+2, Wp=W+2)
    """
    cin, h, w = x_ref.shape
    hp, wp = o_ref.shape
    c = pl.program_id(1)

    # Hoisted per-channel scalars: one SMEM read each, reused by every chunk.
    wk = [w_ref[c * cin + k] for k in range(cin)]
    bc = b_ref[c]

    # 1) Fill the whole padded plane with sigmoid(bias): produces the 1-pixel
    #    border (rows 0 / Hp-1 and columns 0 / Wp-1). VMEM-only double write;
    #    the HBM writeback of this block still happens exactly once.
    o_ref[...] = _sigmoid(jnp.full((hp, wp), bc, dtype=jnp.float32)).astype(o_ref.dtype)

    # 2) Interior rows: out[r+1, 1:W+1] = sigmoid(sum_k w[c,k] * x[k, r, :] + b[c]).
    rc = _pick_row_chunk(h)
    nchunks = pl.cdiv(h, rc)

    def do_chunk(r0):
        xs = [x_ref[k, pl.ds(r0, rc), :].astype(jnp.float32) for k in range(cin)]
        acc = xs[0] * wk[0]
        for k in range(1, cin):
            acc = acc + xs[k] * wk[k]
        y = _sigmoid(acc + bc)
        o_ref[pl.ds(r0 + 1, rc), pl.ds(1, w)] = y.astype(o_ref.dtype)

    if nchunks <= _STATIC_UNROLL_MAX:
        for i in range(nchunks):                          # fully static slice starts
            do_chunk(min(i * rc, h - rc))
    else:
        def body(i, carry):
            # Last chunk anchored at h - rc: a few rows are recomputed with
            # identical values instead of masking; all accesses stay in bounds.
            do_chunk(jnp.minimum(i * rc, h - rc))
            return carry
        lax.fori_loop(0, nchunks, body, 0, unroll=2)


@jax.jit
def out_forward(x, weight, bias):
    """Forward pass of `Out` for NCHW input x.

    x:      (N, Cin, H, W) float
    weight: (Cout, Cin, 1, 1) float  (PyTorch Conv2d layout)
    bias:   (Cout,) float
    returns (N, Cout, H+2, W+2) in x.dtype
    """
    n, cin, h, w = x.shape
    cout = weight.shape[0]
    hp, wp = h + 2, w + 2

    w_flat = weight.astype(jnp.float32).reshape(cout * cin)   # row-major (Cout, Cin)
    b_vec = bias.astype(jnp.float32).reshape(cout)

    # Explicit VMEM budget: double-buffered input image + one output plane,
    # accounted with the (8,128) tiled layout, plus headroom.
    ru = lambda a, m: -(-a // m) * m
    in_blk = cin * ru(h, 8) * ru(w, 128) * 4
    out_blk = ru(hp, 8) * ru(wp, 128) * 4
    vmem_limit = max(2 * (in_blk + out_blk) + (2 << 20), 32 << 20)
    # TODO(synk): images whose whole (Cin, H, W) block exceeds ~24 MiB need an extra
    # row-tiled grid axis to stay inside v7x's 64 MiB VMEM; and N == Cout == 1 leaves
    # a single grid step (one v7x TensorCore idle).

    return pl.pallas_call(
        _out_kernel,
        out_shape=jax.ShapeDtypeStruct((n, cout, hp, wp), x.dtype),
        grid_spec=pltpu.PrefetchScalarGridSpec(
            num_scalar_prefetch=0,
            grid=(n, cout),            # >=2 parallel steps whenever N*Cout >= 2
            in_specs=[
                pl.BlockSpec(memory_space=pltpu.MemorySpace.SMEM),   # weights (scalars)
                pl.BlockSpec(memory_space=pltpu.MemorySpace.SMEM),   # bias    (scalars)
                # Whole image per batch element; the block index ignores the Cout
                # axis so the input stays resident (one HBM fetch per batch element).
                pl.BlockSpec((None, cin, h, w), lambda i, c: (i, 0, 0, 0)),
            ],
            out_specs=pl.BlockSpec((None, None, hp, wp), lambda i, c: (i, c, 0, 0)),
        ),
        compiler_params=pltpu.CompilerParams(
            dimension_semantics=("parallel", "parallel"),
            vmem_limit_bytes=int(vmem_limit),
        ),
    )(w_flat, b_vec, x)


if __name__ == "__main__":
    key = jax.random.PRNGKey(0)
    k_x, k_w, k_b = jax.random.split(key, 3)

    N, IN_CH, OUT_CH, H, W = 2, 4, 3, 16, 16

    x = jax.random.normal(k_x, (N, IN_CH, H, W), dtype=jnp.float32)
    # Deterministic init mimicking PyTorch Conv2d default (uniform in +-1/sqrt(fan_in)).
    fan_in = IN_CH * 1 * 1
    bound = 1.0 / (fan_in ** 0.5)
    weight = jax.random.uniform(k_w, (OUT_CH, IN_CH, 1, 1), jnp.float32, -bound, bound)
    bias = jax.random.uniform(k_b, (OUT_CH,), jnp.float32, -bound, bound)

    out = out_forward(x, weight, bias)
    jax.block_until_ready(out)

    # Reference: full-precision XLA conv + sigmoid.
    ref = lax.conv_general_dilated(
        x, weight, window_strides=(1, 1), padding=((1, 1), (1, 1)),
        dimension_numbers=("NCHW", "OIHW", "NCHW"),
        precision=lax.Precision.HIGHEST)
    ref = jax.nn.sigmoid(ref + bias.reshape(1, OUT_CH, 1, 1))

    assert out.shape == (N, OUT_CH, H + 2, W + 2)
    assert jnp.allclose(out, ref, atol=2e-5, rtol=2e-5)

    print("KERNEL_OK")
</pallas_src>

<mosaic_0001>
module attributes {stable_mosaic.version = 11 : i64} {
  func.func @_out_kernel(%arg0: i32, %arg1: i32, %arg2: memref<12xf32, #tpu.memory_space<smem>>, %arg3: memref<3xf32, #tpu.memory_space<smem>>, %arg4: memref<1x4x16x16xf32, #tpu.memory_space<vmem>>, %arg5: memref<1x1x18x18xf32, #tpu.memory_space<vmem>>) attributes {dimension_semantics = [#tpu.dimension_semantics<parallel>, #tpu.dimension_semantics<parallel>], iteration_bounds = array<i64: 2, 3>, scalar_prefetch = 0 : i64, scratch_operands = 0 : i64, tpu.core_type = #tpu.core_type<tc>, window_params = [{transform_indices = @transform_0, window_bounds = array<i64: 12>}, {transform_indices = @transform_1, window_bounds = array<i64: 3>}, {transform_indices = @transform_2, window_bounds = array<i64: 1, 4, 16, 16>}, {transform_indices = @transform_3, window_bounds = array<i64: 1, 1, 18, 18>}]} {
    %c4_i32 = arith.constant 4 : i32
    %0 = arith.muli %arg1, %c4_i32 : i32
    %c0_i32 = arith.constant 0 : i32
    %1 = arith.addi %0, %c0_i32 : i32
    %2 = arith.index_cast %1 : i32 to index
    %3 = memref.load %arg2[%2] : memref<12xf32, #tpu.memory_space<smem>>
    %c4_i32_0 = arith.constant 4 : i32
    %4 = arith.muli %arg1, %c4_i32_0 : i32
    %c1_i32 = arith.constant 1 : i32
    %5 = arith.addi %4, %c1_i32 : i32
    %6 = arith.index_cast %5 : i32 to index
    %7 = memref.load %arg2[%6] : memref<12xf32, #tpu.memory_space<smem>>
    %c4_i32_1 = arith.constant 4 : i32
    %8 = arith.muli %arg1, %c4_i32_1 : i32
    %c2_i32 = arith.constant 2 : i32
    %9 = arith.addi %8, %c2_i32 : i32
    %10 = arith.index_cast %9 : i32 to index
    %11 = memref.load %arg2[%10] : memref<12xf32, #tpu.memory_space<smem>>
    %c4_i32_2 = arith.constant 4 : i32
    %12 = arith.muli %arg1, %c4_i32_2 : i32
    %c3_i32 = arith.constant 3 : i32
    %13 = arith.addi %12, %c3_i32 : i32
    %14 = arith.index_cast %13 : i32 to index
    %15 = memref.load %arg2[%14] : memref<12xf32, #tpu.memory_space<smem>>
    %16 = arith.index_cast %arg1 : i32 to index
    %17 = memref.load %arg3[%16] : memref<3xf32, #tpu.memory_space<smem>>
    %18 = vector.broadcast %17 : f32 to vector<18x18xf32>
    %cst = arith.constant 5.000000e-01 : f32
    %19 = vector.broadcast %cst : f32 to vector<18x18xf32>
    %20 = arith.mulf %19, %18 : vector<18x18xf32>
    %21 = math.tanh %20 : vector<18x18xf32>
    %cst_3 = arith.constant 5.000000e-01 : f32
    %22 = vector.broadcast %cst_3 : f32 to vector<18x18xf32>
    %23 = arith.mulf %22, %21 : vector<18x18xf32>
    %cst_4 = arith.constant 5.000000e-01 : f32
    %24 = vector.broadcast %cst_4 : f32 to vector<18x18xf32>
    %25 = arith.addf %23, %24 : vector<18x18xf32>
    %c0 = arith.constant 0 : index
    %c0_5 = arith.constant 0 : index
    %c0_6 = arith.constant 0 : index
    %c0_7 = arith.constant 0 : index
    %26 = vector.load %arg5[%c0, %c0_5, %c0_6, %c0_7] : memref<1x1x18x18xf32, #tpu.memory_space<vmem>>, vector<1x1x18x18xf32>
    %27 = vector.shape_cast %26 : vector<1x1x18x18xf32> to vector<18x18xf32>
    %28 = vector.shape_cast %25 : vector<18x18xf32> to vector<1x1x18x18xf32>
    tpu.vector_store %arg5[%c0, %c0_5, %c0_6, %c0_7], %28 {strides = array<i32>} : memref<1x1x18x18xf32, #tpu.memory_space<vmem>>, vector<1x1x18x18xf32>,
    %c0_8 = arith.constant 0 : index
    %c0_9 = arith.constant 0 : index
    %c0_10 = arith.constant 0 : index
    %c0_11 = arith.constant 0 : index
    %29 = vector.load %arg4[%c0_8, %c0_9, %c0_10, %c0_11] : memref<1x4x16x16xf32, #tpu.memory_space<vmem>>, vector<1x1x16x16xf32>
    %30 = vector.shape_cast %29 : vector<1x1x16x16xf32> to vector<16x16xf32>
    %c0_12 = arith.constant 0 : index
    %c1 = arith.constant 1 : index
    %c0_13 = arith.constant 0 : index
    %c0_14 = arith.constant 0 : index
    %31 = vector.load %arg4[%c0_12, %c1, %c0_13, %c0_14] : memref<1x4x16x16xf32, #tpu.memory_space<vmem>>, vector<1x1x16x16xf32>
    %32 = vector.shape_cast %31 : vector<1x1x16x16xf32> to vector<16x16xf32>
    %c0_15 = arith.constant 0 : index
    %c2 = arith.constant 2 : index
    %c0_16 = arith.constant 0 : index
    %c0_17 = arith.constant 0 : index
    %33 = vector.load %arg4[%c0_15, %c2, %c0_16, %c0_17] : memref<1x4x16x16xf32, #tpu.memory_space<vmem>>, vector<1x1x16x16xf32>
    %34 = vector.shape_cast %33 : vector<1x1x16x16xf32> to vector<16x16xf32>
    %c0_18 = arith.constant 0 : index
    %c3 = arith.constant 3 : index
    %c0_19 = arith.constant 0 : index
    %c0_20 = arith.constant 0 : index
    %35 = vector.load %arg4[%c0_18, %c3, %c0_19, %c0_20] : memref<1x4x16x16xf32, #tpu.memory_space<vmem>>, vector<1x1x16x16xf32>
    %36 = vector.shape_cast %35 : vector<1x1x16x16xf32> to vector<16x16xf32>
    %37 = vector.broadcast %3 : f32 to vector<16x16xf32>
    %38 = arith.mulf %30, %37 : vector<16x16xf32>
    %39 = vector.broadcast %7 : f32 to vector<16x16xf32>
    %40 = arith.mulf %32, %39 : vector<16x16xf32>
    %41 = arith.addf %38, %40 : vector<16x16xf32>
    %42 = vector.broadcast %11 : f32 to vector<16x16xf32>
    %43 = arith.mulf %34, %42 : vector<16x16xf32>
    %44 = arith.addf %41, %43 : vector<16x16xf32>
    %45 = vector.broadcast %15 : f32 to vector<16x16xf32>
    %46 = arith.mulf %36, %45 : vector<16x16xf32>
    %47 = arith.addf %44, %46 : vector<16x16xf32>
    %48 = vector.broadcast %17 : f32 to vector<16x16xf32>
    %49 = arith.addf %47, %48 : vector<16x16xf32>
    %cst_21 = arith.constant 5.000000e-01 : f32
    %50 = vector.broadcast %cst_21 : f32 to vector<16x16xf32>
    %51 = arith.mulf %50, %49 : vector<16x16xf32>
    %52 = math.tanh %51 : vector<16x16xf32>
    %cst_22 = arith.constant 5.000000e-01 : f32
    %53 = vector.broadcast %cst_22 : f32 to vector<16x16xf32>
    %54 = arith.mulf %53, %52 : vector<16x16xf32>
    %cst_23 = arith.constant 5.000000e-01 : f32
    %55 = vector.broadcast %cst_23 : f32 to vector<16x16xf32>
    %56 = arith.addf %54, %55 : vector<16x16xf32>
    %c0_24 = arith.constant 0 : index
    %c0_25 = arith.constant 0 : index
    %c1_26 = arith.constant 1 : index
    %c1_27 = arith.constant 1 : index
    %57 = vector.load %arg5[%c0_24, %c0_25, %c1_26, %c1_27] : memref<1x1x18x18xf32, #tpu.memory_space<vmem>>, vector<1x1x16x16xf32>
    %58 = vector.shape_cast %57 : vector<1x1x16x16xf32> to vector<16x16xf32>
    %59 = vector.shape_cast %56 : vector<16x16xf32> to vector<1x1x16x16xf32>
    tpu.vector_store %arg5[%c0_24, %c0_25, %c1_26, %c1_27], %59 {strides = array<i32>} : memref<1x1x18x18xf32, #tpu.memory_space<vmem>>, vector<1x1x16x16xf32>,
    return
  }
  func.func @transform_0(%arg0: i32, %arg1: i32) -> i32 {
    %c0_i32 = arith.constant 0 : i32
    %c0_i32_0 = arith.constant 0 : i32
    return %c0_i32 : i32
  }
  func.func @transform_1(%arg0: i32, %arg1: i32) -> i32 {
    %c0_i32 = arith.constant 0 : i32
    %c0_i32_0 = arith.constant 0 : i32
    return %c0_i32 : i32
  }
  func.func @transform_2(%arg0: i32, %arg1: i32) -> (i32, i32, i32, i32) {
    %c0_i32 = arith.constant 0 : i32
    %c0_i32_0 = arith.constant 0 : i32
    %c0_i32_1 = arith.constant 0 : i32
    %c0_i32_2 = arith.constant 0 : i32
    return %arg0, %c0_i32, %c0_i32_0, %c0_i32_1 : i32, i32, i32, i32
  }
  func.func @transform_3(%arg0: i32, %arg1: i32) -> (i32, i32, i32, i32) {
    %c0_i32 = arith.constant 0 : i32
    %c0_i32_0 = arith.constant 0 : i32
    %c0_i32_1 = arith.constant 0 : i32
    return %arg0, %arg1, %c0_i32, %c0_i32_0 : i32, i32, i32, i32
  }
}

</mosaic_0001>

<bundles_post_ra>
// kernel: out_forward.1
= control target key start
LH: loop header
LB: loop body
LE: loop exit
PB: predicated region body
PF: predicated region fallthrough
CT: control target
= control target key end

     0   :  { %s863_s0 = inlined_call_operand.vmem [shape: f32[12], index: 0, kind: input, shape index: {}]   ;;  %s864_s1 = inlined_call_operand.vmem [shape: f32[3], index: 1, kind: input, shape index: {}]   ;;  %s865_s2 = inlined_call_operand.hbm [shape: f32[2,4,16,16], index: 2, kind: input, shape index: {}]   ;;  %s866_s3 = inlined_call_operand.vmem [shape: f32[2,3,18,18], index: 3, kind: output, shape index: {}]  }
   0x1   :  { %867 = sst [smem:[#allocation11_spill]] %s863_s0 }
   0x2   :  { %8 = vsyncpa [#allocation4], 0 }
   0x3   :  { %9 = vsyncpa [#allocation6], 0 }
   0x4   :  { %10 = vsyncpa [#allocation3], 0 }
   0x5   :  { %12 = vsyncpa [#allocation3 + $0x1], 0  ;;  %s719_s12 = smov 0   ;;  %s721_s13 = smov 0  }
   0x6   :  { %s723_s14 = smov 0   ;;  %s725_s15 = smov 0  }
   0x7   :  { %s727_s16 = smov 0   ;;  %s729_s17 = smov 0  }
   0x8   :  { %s731_s18 = smov 0   ;;  %s733_s19 = smov 0  }
   0x9 LB: > { %s431_s20 = sadd.s32 4294967295, %s692_s19   ;;  %s79_s21 = sadd.s32 1, %s672_s14  ;;  %s692_s19 = sphi %s733_s19, %s18_s19   ;;  %s688_s18 = sphi %s731_s18, %s879_s18   ;;  %s684_s17 = sphi %s729_s17, %s878_s17   ;;  %s680_s16 = sphi %s727_s16, %s877_s16   ;;  %s676_s15 = sphi %s725_s15, %s876_s15   ;;  %s672_s14 = sphi %s723_s14, %s875_s14   ;;  %s668_s13 = sphi %s721_s13, %s874_s13   ;;  %s664_s12 = sphi %s719_s12, %s873_s12  }
   0xa   : > { %p86_p0 = scmp.ne.s32.totalorder %s672_s14, %s668_s13  ;;  %p87_p1 = scmp.eq.s32.totalorder %s692_s19, 0 }
   0xb   : > { %p92_p2 = scmp.ne.s32.totalorder %s668_s13, %s664_s12  ;;  %p763_p3 = scmp.eq.s32.totalorder %s431_s20, 0 }
   0xc   : > { %p88_p4 = por %p87_p1, %p86_p0  ;;  %p433_p5 = scmp.ge.s32.totalorder %s692_s19, 1 }
   0xd   : > { %p770_p6 = por %p763_p3, %p92_p2  ;;  %p131_p7 = scmp.lt.s32.totalorder %s692_s19, 7 }
   0xe   : > { %s870_s0 = sld [smem:[#allocation11_spill]]  ;;  %p480_p10 = scmp.lt.s32.totalorder %s692_s19, 6 }
   0xf   : > { %p778_p8 = pnand %p433_p5, %p131_p7  ;;  %s153_s30 = sshll.u32 %s864_s1, 4  ;;  %s154_s30 = int_to_ptr.vmem [resolvable:$true] %s153_s30 }
  0x10   : > { %p790_p12 = pnand %p480_p10, %p88_p4  ;;  %s694_s5 = smov [#allocation2]  }
  0x11   : > { %p467_p9 = pneg %p778_p8  ;;  %s695_s6 = smov [#allocation5]  }
  0x12   : > { %s27_s7 = sadd.s32 1, %s684_s17  ;;  %s30_s8 = sadd.s32 1, %s688_s18 }
  0x13   : > { %p468_p11 = pnand %p467_p9, %p763_p3  ;;  %p28_p13 = scmp.ge.s32.totalorder %s27_s7, 3 }
  0x14   : > { %s143_s26 = sshll.u32 %s870_s0, 4  ;;  %s164_s9 = sand.u32 1, %s672_s14   ;;  %s144_s26 = int_to_ptr.vmem [resolvable:$true] %s143_s26 }
  0x15   : > { %470 = dma.vmem_to_smem (!%p468_p11), %s144_s26, 16, %s694_s5, [#allocation4]  }
  0x16   : > { %473 = dma.vmem_to_smem (!%p468_p11), %s154_s30, 16, %s695_s6, [#allocation6]  }
  0x17   : > { %s454_s10 = sshll.u32 %s688_s18, 6  ;;  %s881_s7 = smov (%p28_p13, %s27_s7), 0 }
  0x18   : > { %s883_s8 = smov (!%p28_p13, %s30_s8), %s688_s18  ;;  %s437_s11 = sshll.u32 %s164_s9, 6 }
  0x19   : > { %p32_p0 = scmp.ge.s32.totalorder %s883_s8, 2  ;;  %s173_s24 = scalar_lea.hbm %s865_s2, %s454_s10 }
  0x1a   : > { %s168_s25 = scalar_lea.vmem [#allocation7], %s437_s11  ;;  %s174_s28 = sshll.u32 %s173_s24, 4  ;;  %s175_s28 = int_to_ptr.hbm [resolvable:$true] %s174_s28 }
  0x1b   : > { %s176_s26 = sshll.u32 %s168_s25, 4  ;;  %s885_s8 = smov (%p32_p0, %s883_s8), 0  ;;  %s177_s26 = int_to_ptr.vmem [resolvable:$true] %s176_s26 }
  0x1c   : > { %s76_s29 = ssub.s32 %s688_s18, %s885_s8  ;;  %s165_s5 = scalar_lea.sflag [#allocation3], %s164_s9 }
  0x1d   : > { %p77_p1 = scmp.eq.s32.totalorder %s76_s29, 0  ;;  %s696_s6 = smov 128  }
  0x1e   : > { %s697_s0 = smov 8   ;;  %188 = sbr.rel (%p778_p8) target bundleno = 200 (0xc8), region = 32 }
  0x1f   : > { %s811_s30 = scalar_select %p77_p1, %s672_s14, %s79_s21  }
  0x20   : > { %477 = dma.hbm_to_vmem [thread:$0]  (!%p790_p12), %s175_s28, 1024, %s177_s26, %s165_s5, %s696_s6, %s696_s6, %s697_s0  }
  0x23   : > { %651 = dma.done.wait (%p763_p3), [#allocation4], 16  }
  0x24   : > { %653 = vsyncadd (%p763_p3), [#allocation4], 4294967280 }
  0x25   : > { %655 = dma.done.wait (%p763_p3), [#allocation6], 16  }
  0x26   : > { %657 = vsyncadd (%p763_p3), [#allocation6], 4294967280  ;;  %s200_s21 = sand.u32 1, %s668_s13  }
  0x27   : > { %s443_s4 = sshll.u32 %s200_s21, 6  ;;  %s201_s0 = scalar_lea.sflag [#allocation3], %s200_s21 }
  0x28   : > { %s204_s9 = scalar_lea.vmem [#allocation7], %s443_s4 }
  0x29   : > { %659 = dma.done.wait (%p770_p6), %s201_s0, 1024  }
  0x2a   : > { %661 = vsyncadd (%p770_p6), %s201_s0, 4294966272 }
  0x2b   : > { %210 = sfence }
  0x2c   : > { %s445_s27 = sshll.u32 %s676_s15, 2  ;;  %s250_s10 = sld [smem:[#allocation5 + %s676_s15]]  ;;  %v261_v0 = vld [vmem:[%s204_s9] sm:$0xff]  ;;  %v262_v1 = vld [vmem:[%s204_s9 + $0x8] sm:$0xff]  ;;  %v446_v3 = vld [vmem:[%s204_s9 + $0x10] sm:$0xff]  ;;  %vm256_vm0 = vcmask 146432  }
  0x2d   : > { %s243_s11 = sld [smem:[#allocation2 + %s445_s27]]  ;;  %s244_s12 = sadd.s32 1, %s445_s27  ;;  %v447_v4 = vld [vmem:[%s204_s9 + $0x18] sm:$0xff]  ;;  %v448_v6 = vld [vmem:[%s204_s9 + $0x20] sm:$0xff]  ;;  %v449_v7 = vld [vmem:[%s204_s9 + $0x28] sm:$0xff]  ;;  %vm259_vm1 = vcmask 140288  }
  0x2e   : > { %s245_s22 = sld [smem:[#allocation2 + %s244_s12]]  ;;  %s246_s20 = sadd.s32 2, %s445_s27  ;;  %v450_v9 = vld [vmem:[%s204_s9 + $0x30] sm:$0xff]  ;;  %v451_v10 = vld [vmem:[%s204_s9 + $0x38] sm:$0xff]  ;;  %vm308_vm2 = vcmask 138248  }
  0x2f   : > { %s247_s24 = sld [smem:[#allocation2 + %s246_s20]]  ;;  %s248_s25 = sadd.s32 3, %s445_s27 }
  0x30   : > { %s249_s26 = sld [smem:[#allocation2 + %s248_s25]]  ;;  %p233_p2 = scmp.lt.s32.totalorder %s680_s16, 1 }
  0x31   : > { %p235_p3 = scmp.lt.s32.totalorder %s676_s15, 2 }
  0x32   : > { %v251_v2 = vstv %s250_s10  ;;  %s887_s16 = smov (!%p233_p2, %s680_s16), 1 }
  0x33   : > { %v252_v5 = vmul.f32 0.5, %v251_v2  ;;  %v272_v8 = vstv %s243_s11  ;;  %s889_s15 = smov (!%p235_p3, %s676_s15), 2  ;;  %s456_s23 = smul.u32 9, %s887_s16 }
  0x34   : > { %v273_v11 = vmul.f32 %v272_v8, %v261_v0  ;;  %v274_v12 = vmul.f32 %v272_v8, %v262_v1  ;;  %v275_v13 = vstv %s245_s22  ;;  %s455_s28 = smul.u32 3, %s889_s15  ;;  %s698_s15 = smov 1  }
  0x35   : > { %552 = vtanh.f32 %v252_v5  ;;  %v276_v14 = vmul.f32 %v446_v3, %v275_v13  ;;  %v277_v15 = vmul.f32 %v447_v4, %v275_v13  ;;  %v280_v16 = vstv %s247_s24 }
  0x36   : > { %v281_v17 = vmul.f32 %v448_v6, %v280_v16  ;;  %v282_v18 = vmul.f32 %v449_v7, %v280_v16  ;;  %v285_v19 = vstv %s249_s26  ;;  %s239_s29 = sadd.s32 %s456_s23, %s455_s28 }
  0x37   : > { %v278_v20 = vadd.f32 %v276_v14, %v273_v11  ;;  %v286_v21 = vmul.f32 %v450_v9, %v285_v19  ;;  %v287_v22 = vmul.f32 %v451_v10, %v285_v19  ;;  %v279_v23 = vadd.f32 %v277_v15, %v274_v12  ;;  %s444_s5 = sshll.u32 %s239_s29, 3 }
  0x38   : > { %s241_s4 = scalar_lea.vmem %s866_s3, %s444_s5 }
  0x39   : > { %v283_v24 = vadd.f32 %v281_v17, %v278_v20  ;;  %v284_v25 = vadd.f32 %v282_v18, %v279_v23 }
  0x3b   : > { %v553_v26 = vpop.eup %552  ;;  %v288_v27 = vadd.f32 %v286_v21, %v283_v24  ;;  %v289_v28 = vadd.f32 %v287_v22, %v284_v25 }
  0x3c   : > { %v254_v29 = vmul.f32 0.5, %v553_v26 }
  0x3d   : > { %v290_v30 = vadd.f32 %v288_v27, %v251_v2  ;;  %v291_v31 = vadd.f32 %v289_v28, %v251_v2 }
  0x3e   : > { %v255_v32 = vadd.f32 0.5, %v254_v29 }
  0x3f   : > { %v292_v33 = vmul.f32 0.5, %v290_v30  ;;  %v293_v34 = vmul.f32 0.5, %v291_v31 }
  0x40   : > { %257 = vst.msk [vmem:[%s241_s4] sm:$0xff] %vm256_vm0, %v255_v32 }
  0x41   : > { %554 = vtanh.f32 %v292_v33  ;;  %258 = vst.msk [vmem:[%s241_s4 + $0x8] sm:$0xff] %vm256_vm0, %v255_v32 }
  0x42   : > { %556 = vtanh.f32 %v293_v34  ;;  %260 = vst.msk [vmem:[%s241_s4 + $0x10] sm:$0x3] %vm259_vm1, %v255_v32 }
  0x47   : > { %v555_v35 = vpop.eup %554 }
  0x48   : > { %v296_v36 = vmul.f32 0.5, %v555_v35  ;;  %v557_v37 = vpop.eup %556 }
  0x49   : > { %v297_v39 = vmul.f32 0.5, %v557_v37 }
  0x4a   : > { %v298_v38 = vadd.f32 0.5, %v296_v36 }
  0x4b   : > { %v299_v40 = vadd.f32 0.5, %v297_v39 }
  0x4c   : > { %302 = vrot.lane.b32.xlu0 %v298_v38, %s698_s15 }
  0x54   : > { %304 = vrot.lane.b32.xlu0 %v299_v40, %s698_s15 }
  0xbe   : > { %v303_v41 = vpop.permute.xlu0 %302 }
  0xbf   : > { %309 = vst.msk [vmem:[%s241_s4 + $0x1] sm:$0xff] %vm308_vm2, %v303_v41 }
  0xc6   : > { %v305_v42 = vpop.permute.xlu0 %304 }
  0xc7   : > { %310 = vst.msk [vmem:[%s241_s4 + $0x9] sm:$0xff] %vm308_vm2, %v305_v42 }
  0xc8 PF: > { %s18_s19 = sadd.s32 1, %s692_s19   ;;  %s873_s12 = smov %s668_s13 }
  0xc9   : > { %p15_p4 = scmp.ge.s32.totalorder %s18_s19, 8   ;;  %s874_s13 = smov %s672_s14 }
  0xca   : > { %s875_s14 = smov %s811_s30  ;;  %s876_s15 = smov %s684_s17 }
  0xcb   : > { %s877_s16 = smov %s688_s18  ;;  %s878_s17 = smov %s881_s7 }
  0xcc   : > { %s879_s18 = smov %s885_s8  ;;  %17 = sbr.rel (!%p15_p4) target bundleno = 9 (0x9), region = 84 }
  0xd1   :  { %340 = vsyncpa [#allocation3], 1 }
  0xd2   :  { %342 = vsyncpa [#allocation3 + $0x1], 1 }
  0xd3   :  { %343 = vsyncpa [#allocation4], 1 }
  0xd4   :  { %345 = vsyncpa [#allocation4 + $0x1], 1 }
  0xd5   :  { %346 = vsyncpa [#allocation6], 1 }

</bundles_post_ra>
